<compile_context>
chip_gen: v7x
topology: tpu7x:2x2x1
jax: 0.10.0
libtpu: 0.0.40
codegen_flags: <defaults>
</compile_context>

<pallas_src>
import math

import jax
import jax.numpy as jnp
from jax.experimental import pallas as pl
from jax.experimental.pallas import tpu as pltpu


def _round_up(x: int, m: int) -> int:
    return ((x + m - 1) // m) * m


def _mlp_kernel(x_ref, w1_ref, b1_ref, w2_ref, b2_ref, w3_ref, b3_ref, o_ref):
    # observation.float() semantics + bf16 MXU operands: cast in-kernel
    # (free VPU work hidden under the DMA); accumulate every matmul in f32.
    x = x_ref[...].astype(jnp.float32).astype(jnp.bfloat16)
    h1 = jnp.dot(x, w1_ref[...], preferred_element_type=jnp.float32)
    h1 = jnp.maximum(h1 + b1_ref[...], 0.0)
    h2 = jnp.dot(h1.astype(jnp.bfloat16), w2_ref[...],
                 preferred_element_type=jnp.float32)
    h2 = jnp.maximum(h2 + b2_ref[...], 0.0)
    q = jnp.dot(h2.astype(jnp.bfloat16), w3_ref[...],
                preferred_element_type=jnp.float32)
    o_ref[...] = q + b3_ref[...]


def action_state_network_forward(observation, params, *, tb_max: int = 4096):
    """Fused MLP forward, batch-tiled over a 1-D 'parallel' grid.

    observation: [B, state_dim + action_dim]  (any float dtype; cast in-kernel
                 like observation.float() in the PyTorch module)
    params:      output of prepare_params() — bf16 [in,out] weights,
                 f32 [1,out] biases
    returns:     [B, action_dim] float32 Q-values
    """
    B, K = observation.shape
    H1 = params["w1"].shape[1]
    H2 = params["w2"].shape[1]
    A = params["w3"].shape[1]

    # Batch tile: ~B/2 so the grid has >= 2 steps (both v7x TCs busy), rounded
    # to a multiple of 16 (clean sublane tiling), capped by tb_max.
    TB = max(16, min(_round_up(tb_max, 16), _round_up(pl.cdiv(B, 2), 16)))

    # Only tiny batches (B < one tile) need padding; larger batches rely on
    # Pallas' ragged-last-block handling (no extra HBM copies, no wasted rows).
    x = observation
    Bp = B
    if B < TB:
        Bp = TB
        x = jnp.pad(observation, ((0, TB - B), (0, 0)))

    grid = pl.cdiv(Bp, TB)

    out = pl.pallas_call(
        _mlp_kernel,
        out_shape=jax.ShapeDtypeStruct((Bp, A), jnp.float32),
        grid=(grid,),
        in_specs=[
            pl.BlockSpec((TB, K), lambda i: (i, 0)),    # x: streamed, native K (no lane pad)
            pl.BlockSpec((K, H1), lambda i: (0, 0)),    # w1: VMEM-resident
            pl.BlockSpec((1, H1), lambda i: (0, 0)),    # b1: resident
            pl.BlockSpec((H1, H2), lambda i: (0, 0)),   # w2: resident
            pl.BlockSpec((1, H2), lambda i: (0, 0)),    # b2: resident
            pl.BlockSpec((H2, A), lambda i: (0, 0)),    # w3: resident
            pl.BlockSpec((1, A), lambda i: (0, 0)),     # b3: resident
        ],
        out_specs=pl.BlockSpec((TB, A), lambda i: (i, 0)),
        compiler_params=pltpu.CompilerParams(
            dimension_semantics=("parallel",),          # dual-TC sharding on v7x
            vmem_limit_bytes=32 * 1024 * 1024,
        ),
    )(x, params["w1"], params["b1"], params["w2"], params["b2"],
      params["w3"], params["b3"])

    return out if Bp == B else out[:B]


def prepare_params(raw_params):
    """One-time conversion to the kernel's layout/dtypes (call once, reuse).

    Weights become [in, out] bf16 (MXU operands); biases [1, out] f32.
    Doing this once keeps per-forward HBM traffic to just the observation
    stream and the small Q-value output.
    """
    p = {}
    for i in (1, 2, 3):
        p[f"w{i}"] = raw_params[f"w{i}"].astype(jnp.bfloat16)
        p[f"b{i}"] = raw_params[f"b{i}"].reshape(1, -1).astype(jnp.float32)
    return p


def init_params(state_dim: int, action_dim: int, key):
    """nn.Linear-style init: U(-1/sqrt(fan_in), +1/sqrt(fan_in)); weights stored [in, out]."""
    hidden1, hidden2 = 256, 64
    dims = [(state_dim + action_dim, hidden1), (hidden1, hidden2), (hidden2, action_dim)]
    params = {}
    for i, (fan_in, fan_out) in enumerate(dims, start=1):
        key, kw, kb = jax.random.split(key, 3)
        bound = 1.0 / math.sqrt(fan_in)
        params[f"w{i}"] = jax.random.uniform(
            kw, (fan_in, fan_out), jnp.float32, minval=-bound, maxval=bound)
        params[f"b{i}"] = jax.random.uniform(
            kb, (1, fan_out), jnp.float32, minval=-bound, maxval=bound)
    return params


def _reference_forward_f32(obs, p):
    h1 = jnp.maximum(obs @ p["w1"] + p["b1"], 0.0)
    h2 = jnp.maximum(h1 @ p["w2"] + p["b2"], 0.0)
    return h2 @ p["w3"] + p["b3"]


def _reference_forward_bf16(obs, p):
    # Same bf16-operand / f32-accumulate scheme as the kernel, in plain JAX.
    f32 = jnp.float32
    x = obs.astype(jnp.bfloat16).astype(f32)
    w1 = p["w1"].astype(jnp.bfloat16).astype(f32)
    w2 = p["w2"].astype(jnp.bfloat16).astype(f32)
    w3 = p["w3"].astype(jnp.bfloat16).astype(f32)
    h1 = jnp.maximum(x @ w1 + p["b1"], 0.0)
    h2 = jnp.maximum(h1.astype(jnp.bfloat16).astype(f32) @ w2 + p["b2"], 0.0)
    return h2.astype(jnp.bfloat16).astype(f32) @ w3 + p["b3"]


if __name__ == "__main__":
    state_dim, action_dim, batch = 8, 4, 2

    key = jax.random.PRNGKey(0)
    key, kobs = jax.random.split(key)
    observation = jax.random.normal(kobs, (batch, state_dim + action_dim), jnp.float32)
    raw = init_params(state_dim, action_dim, key)
    params = prepare_params(raw)

    # Tiny batch (single grid step, minimal pad path).
    value = jax.block_until_ready(action_state_network_forward(observation, params))
    assert value.shape == (batch, action_dim)
    assert jnp.allclose(value, _reference_forward_bf16(observation, raw), atol=1e-2, rtol=1e-2)
    assert jnp.allclose(value, _reference_forward_f32(observation, raw), atol=5e-2, rtol=5e-2)

    # Larger batch: multi-step grid with a ragged last block (300 = 2*128 + 44),
    # no wrapper-side padding/slicing.
    key, kobs2 = jax.random.split(key)
    obs2 = jax.random.normal(kobs2, (300, state_dim + action_dim), jnp.float32)
    val2 = jax.block_until_ready(
        action_state_network_forward(obs2, params, tb_max=128))
    assert val2.shape == (300, action_dim)
    assert jnp.allclose(val2, _reference_forward_f32(obs2, raw), atol=5e-2, rtol=5e-2)
    assert not bool(jnp.any(jnp.isnan(val2)))

    print("KERNEL_OK")
</pallas_src>

<mosaic_0001>
module attributes {stable_mosaic.version = 11 : i64} {
  func.func @_mlp_kernel(%arg0: i32, %arg1: memref<16x12xf32, #tpu.memory_space<vmem>>, %arg2: memref<12x256xbf16, #tpu.memory_space<vmem>>, %arg3: memref<1x256xf32, #tpu.memory_space<vmem>>, %arg4: memref<256x64xbf16, #tpu.memory_space<vmem>>, %arg5: memref<1x64xf32, #tpu.memory_space<vmem>>, %arg6: memref<64x4xbf16, #tpu.memory_space<vmem>>, %arg7: memref<1x4xf32, #tpu.memory_space<vmem>>, %arg8: memref<16x4xf32, #tpu.memory_space<vmem>>) attributes {dimension_semantics = [#tpu.dimension_semantics<parallel>], iteration_bounds = array<i64: 1>, scalar_prefetch = 0 : i64, scratch_operands = 0 : i64, tpu.core_type = #tpu.core_type<tc>, window_params = [{transform_indices = @transform_0, window_bounds = array<i64: 16, 12>}, {pipeline_mode = #tpu.pipeline_mode<synchronous>, transform_indices = @transform_1, window_bounds = array<i64: 12, 256>}, {pipeline_mode = #tpu.pipeline_mode<synchronous>, transform_indices = @transform_2, window_bounds = array<i64: 1, 256>}, {pipeline_mode = #tpu.pipeline_mode<synchronous>, transform_indices = @transform_3, window_bounds = array<i64: 256, 64>}, {pipeline_mode = #tpu.pipeline_mode<synchronous>, transform_indices = @transform_4, window_bounds = array<i64: 1, 64>}, {pipeline_mode = #tpu.pipeline_mode<synchronous>, transform_indices = @transform_5, window_bounds = array<i64: 64, 4>}, {pipeline_mode = #tpu.pipeline_mode<synchronous>, transform_indices = @transform_6, window_bounds = array<i64: 1, 4>}, {transform_indices = @transform_7, window_bounds = array<i64: 16, 4>}]} {
    %c0 = arith.constant 0 : index
    %c0_0 = arith.constant 0 : index
    %0 = vector.load %arg1[%c0, %c0_0] : memref<16x12xf32, #tpu.memory_space<vmem>>, vector<16x12xf32>
    %1 = arith.truncf %0 : vector<16x12xf32> to vector<16x12xbf16>
    %c0_1 = arith.constant 0 : index
    %c0_2 = arith.constant 0 : index
    %2 = vector.load %arg2[%c0_1, %c0_2] : memref<12x256xbf16, #tpu.memory_space<vmem>>, vector<12x256xbf16>
    %cst = arith.constant dense<0.000000e+00> : vector<16x256xf32>
    %3 = tpu.matmul %1, %2, %cst {dimension_numbers = #tpu.dot_dimension_numbers<[1], [0], [0], [1], [0, 0, 1, 1], [], []>} : vector<16x12xbf16>, vector<12x256xbf16>, vector<16x256xf32> -> vector<16x256xf32>
    %c0_3 = arith.constant 0 : index
    %c0_4 = arith.constant 0 : index
    %4 = vector.load %arg3[%c0_3, %c0_4] : memref<1x256xf32, #tpu.memory_space<vmem>>, vector<1x256xf32>
    %5 = vector.broadcast %4 : vector<1x256xf32> to vector<16x256xf32>
    %6 = arith.addf %3, %5 : vector<16x256xf32>
    %cst_5 = arith.constant 0.000000e+00 : f32
    %7 = vector.broadcast %cst_5 : f32 to vector<16x256xf32>
    %8 = arith.maximumf %6, %7 : vector<16x256xf32>
    %9 = arith.truncf %8 : vector<16x256xf32> to vector<16x256xbf16>
    %c0_6 = arith.constant 0 : index
    %c0_7 = arith.constant 0 : index
    %10 = vector.load %arg4[%c0_6, %c0_7] : memref<256x64xbf16, #tpu.memory_space<vmem>>, vector<256x64xbf16>
    %cst_8 = arith.constant dense<0.000000e+00> : vector<16x64xf32>
    %11 = tpu.matmul %9, %10, %cst_8 {dimension_numbers = #tpu.dot_dimension_numbers<[1], [0], [0], [1], [0, 0, 1, 1], [], []>} : vector<16x256xbf16>, vector<256x64xbf16>, vector<16x64xf32> -> vector<16x64xf32>
    %c0_9 = arith.constant 0 : index
    %c0_10 = arith.constant 0 : index
    %12 = vector.load %arg5[%c0_9, %c0_10] : memref<1x64xf32, #tpu.memory_space<vmem>>, vector<1x64xf32>
    %13 = vector.broadcast %12 : vector<1x64xf32> to vector<16x64xf32>
    %14 = arith.addf %11, %13 : vector<16x64xf32>
    %cst_11 = arith.constant 0.000000e+00 : f32
    %15 = vector.broadcast %cst_11 : f32 to vector<16x64xf32>
    %16 = arith.maximumf %14, %15 : vector<16x64xf32>
    %17 = arith.truncf %16 : vector<16x64xf32> to vector<16x64xbf16>
    %c0_12 = arith.constant 0 : index
    %c0_13 = arith.constant 0 : index
    %18 = vector.load %arg6[%c0_12, %c0_13] : memref<64x4xbf16, #tpu.memory_space<vmem>>, vector<64x4xbf16>
    %cst_14 = arith.constant dense<0.000000e+00> : vector<16x4xf32>
    %19 = tpu.matmul %17, %18, %cst_14 {dimension_numbers = #tpu.dot_dimension_numbers<[1], [0], [0], [1], [0, 0, 1, 1], [], []>} : vector<16x64xbf16>, vector<64x4xbf16>, vector<16x4xf32> -> vector<16x4xf32>
    %c0_15 = arith.constant 0 : index
    %c0_16 = arith.constant 0 : index
    %20 = vector.load %arg7[%c0_15, %c0_16] : memref<1x4xf32, #tpu.memory_space<vmem>>, vector<1x4xf32>
    %21 = vector.broadcast %20 : vector<1x4xf32> to vector<16x4xf32>
    %22 = arith.addf %19, %21 : vector<16x4xf32>
    %c0_17 = arith.constant 0 : index
    %c0_18 = arith.constant 0 : index
    %23 = vector.load %arg8[%c0_17, %c0_18] : memref<16x4xf32, #tpu.memory_space<vmem>>, vector<16x4xf32>
    tpu.vector_store %arg8[%c0_17, %c0_18], %22 {strides = array<i32>} : memref<16x4xf32, #tpu.memory_space<vmem>>, vector<16x4xf32>,
    return
  }
  func.func @transform_0(%arg0: i32) -> (i32, i32) {
    %c0_i32 = arith.constant 0 : i32
    %c0_i32_0 = arith.constant 0 : i32
    return %arg0, %c0_i32 : i32, i32
  }
  func.func @transform_1(%arg0: i32) -> (i32, i32) {
    %c0_i32 = arith.constant 0 : i32
    %c0_i32_0 = arith.constant 0 : i32
    %c0_i32_1 = arith.constant 0 : i32
    return %c0_i32, %c0_i32_0 : i32, i32
  }
  func.func @transform_2(%arg0: i32) -> (i32, i32) {
    %c0_i32 = arith.constant 0 : i32
    %c0_i32_0 = arith.constant 0 : i32
    %c0_i32_1 = arith.constant 0 : i32
    return %c0_i32, %c0_i32_0 : i32, i32
  }
  func.func @transform_3(%arg0: i32) -> (i32, i32) {
    %c0_i32 = arith.constant 0 : i32
    %c0_i32_0 = arith.constant 0 : i32
    %c0_i32_1 = arith.constant 0 : i32
    return %c0_i32, %c0_i32_0 : i32, i32
  }
  func.func @transform_4(%arg0: i32) -> (i32, i32) {
    %c0_i32 = arith.constant 0 : i32
    %c0_i32_0 = arith.constant 0 : i32
    %c0_i32_1 = arith.constant 0 : i32
    return %c0_i32, %c0_i32_0 : i32, i32
  }
  func.func @transform_5(%arg0: i32) -> (i32, i32) {
    %c0_i32 = arith.constant 0 : i32
    %c0_i32_0 = arith.constant 0 : i32
    %c0_i32_1 = arith.constant 0 : i32
    return %c0_i32, %c0_i32_0 : i32, i32
  }
  func.func @transform_6(%arg0: i32) -> (i32, i32) {
    %c0_i32 = arith.constant 0 : i32
    %c0_i32_0 = arith.constant 0 : i32
    %c0_i32_1 = arith.constant 0 : i32
    return %c0_i32, %c0_i32_0 : i32, i32
  }
  func.func @transform_7(%arg0: i32) -> (i32, i32) {
    %c0_i32 = arith.constant 0 : i32
    %c0_i32_0 = arith.constant 0 : i32
    return %arg0, %c0_i32 : i32, i32
  }
}

</mosaic_0001>

<bundles_post_ra>
// kernel: tpu_custom_call.1
= control target key start
LH: loop header
LB: loop body
LE: loop exit
PB: predicated region body
PF: predicated region fallthrough
CT: control target
= control target key end

     0   :  { %vm56_vm0 = vcmask 1045504   ;;  %v474_v1 = vmov 0   ;;  %vm52_vm1 = vcmask 97280   ;;  %v475_v23 = vmov 0.0   ;;  %s604_s1 = inlined_call_operand.vmem [shape: bf16[12,256], index: 1, kind: input, shape index: {}]   ;;  %s605_s0 = inlined_call_operand.vmem [shape: f32[16,12], index: 0, kind: input, shape index: {}]   ;;  %s606_s3 = inlined_call_operand.vmem [shape: bf16[256,64], index: 3, kind: input, shape index: {}]   ;;  %s607_s5 = inlined_call_operand.vmem [shape: bf16[64,4], index: 5, kind: input, shape index: {}]   ;;  %s608_s2 = inlined_call_operand.vmem [shape: f32[1,256], index: 2, kind: input, shape index: {}]   ;;  %s609_s4 = inlined_call_operand.vmem [shape: f32[1,64], index: 4, kind: input, shape index: {}]   ;;  %s610_s6 = inlined_call_operand.vmem [shape: f32[1,4], index: 6, kind: input, shape index: {}]   ;;  %s611_s7 = inlined_call_operand.vmem [shape: f32[16,4], index: 7, kind: output, shape index: {}]  }
   0x1   :  { %v451_v0 = vld [vmem:[%s604_s1 + $0x4] ss:$8 sps:$4 sm:$0x3f]   ;;  %95 = vmatprep.mubr.bf16.mxu0 %v474_v1  ;;  %v453_v2 = vld [vmem:[%s604_s1] ss:$8 sps:$4 sm:$0x3f]   ;;  %v34_v25 = vlaneseq }
   0x2   :  { %v27_v3 = vld [vmem:[%s605_s0] sm:$0xff]  ;;  %v28_v4 = vld [vmem:[%s605_s0 + $0x8] sm:$0xff]  ;;  %384 = vmatprep.subr.msk.bf16.mxu0 %vm56_vm0, %v451_v0  ;;  %v58_v6 = vsel %vm56_vm0, %v453_v2, 0  ;;  %v458_v11 = vld [vmem:[%s606_s3 + $0x50] sm:$0xff]   ;;  %vm476_vm2 = vmmov 0   ;;  %vm330_vm3 = vcmask 523264  }
   0x3   :  { %v454_v5 = vld [vmem:[%s606_s3 + $0x40] sm:$0xff]   ;;  %v29_v7 = vpack.c.bf16 %v28_v4, %v27_v3  ;;  %64 = vmatpush1.bf16.msra.mxu0 %v58_v6  ;;  %v456_v9 = vld [vmem:[%s606_s3 + $0x48] sm:$0xff]   ;;  %v459_v12 = vld [vmem:[%s606_s3 + $0x10] sm:$0xff]   ;;  %v35_v26 = vshrl.u32 %v34_v25, 7  ;;  %vm375_vm4 = vcmask 31744  }
   0x4   :  { %v455_v8 = vld [vmem:[%s606_s3] sm:$0xff]   ;;  %409 = vmatprep.subr.bf16.mxu1 %v454_v5  ;;  %v457_v10 = vld [vmem:[%s606_s3 + $0x8] sm:$0xff]   ;;  %v460_v13 = vld [vmem:[%s606_s3 + $0x58] sm:$0xff]   ;;  %436 = vmatprep.subr.bf16.mxu0 %v475_v23 }
   0x5   :  { %410 = vmatpush3.bf16.msra.mxu1 %v455_v8  ;;  %v461_v14 = vld [vmem:[%s606_s3 + $0x18] sm:$0xff]   ;;  %v462_v15 = vld [vmem:[%s606_s3 + $0x60] sm:$0xff]   ;;  %v464_v17 = vld [vmem:[%s606_s3 + $0x68] sm:$0xff]   ;;  %v36_v27 = vsub.s32 0, %v35_v26  ;;  %v40_v29 = vsub.s32 1, %v35_v26 }
   0x6   :  { %411 = vmatprep.subr.bf16.mxu1 %v456_v9  ;;  %385 = vmatmul.mubr.msk.bf16.vlgmr.msra.gmra.mrb[0].mxu0 %vm52_vm1, %v29_v7  ;;  %v463_v16 = vld [vmem:[%s606_s3 + $0x20] sm:$0xff]   ;;  %v465_v18 = vld [vmem:[%s606_s3 + $0x28] sm:$0xff]   ;;  %v466_v19 = vld [vmem:[%s606_s3 + $0x70] sm:$0xff]  }
   0x7   :  { %v467_v20 = vld [vmem:[%s606_s3 + $0x30] sm:$0xff]   ;;  %v468_v21 = vld [vmem:[%s606_s3 + $0x78] sm:$0xff]   ;;  %v470_v24 = vld [vmem:[%s607_s5] sm:$0xff]   ;;  %444 = vmatprep.mubr.msk.bf16.mxu0 %vm476_vm2, %v475_v23 }
   0x8   :  { %v469_v22 = vld [vmem:[%s606_s3 + $0x38] sm:$0xff]   ;;  %437 = vmatpush3.bf16.msra.mxu0 %v470_v24  ;;  %v32_v28 = vld [vmem:[%s608_s2] sm:$0x3]  ;;  %v471_v46 = vld [vmem:[%s607_s5 + $0x8] sm:$0xff]  }
   0x9   :  { %412 = vmatpush3.bf16.msra.mxu1 %v457_v10  ;;  %438 = vmatprep.subr.bf16.mxu0 %v475_v23  ;;  %v37_v30 = vrot.slane %v32_v28, %v36_v27  ;;  %v41_v31 = vrot.slane %v32_v28, %v40_v29  ;;  %v472_v47 = vld [vmem:[%s607_s5 + $0x10] sm:$0xff]   ;;  %v473_v48 = vld [vmem:[%s607_s5 + $0x18] sm:$0xff]   ;;  %v386_v50 = vld [vmem:[%s609_s4] ss:$0 sm:$0xff] }
   0xa   :  { %413 = vmatprep.subr.bf16.mxu1 %v458_v11  ;;  %v403_v61 = vld [vmem:[%s610_s6] ss:$0 sm:$0xff] }
   0xc   :  { %439 = vmatpush3.bf16.msra.mxu0 %v471_v46 }
   0xd   :  { %414 = vmatpush3.bf16.msra.mxu1 %v459_v12  ;;  %440 = vmatprep.subr.bf16.mxu0 %v475_v23 }
   0xe   :  { %415 = vmatprep.subr.bf16.mxu1 %v460_v13 }
  0x10   :  { %441 = vmatpush3.bf16.msra.mxu0 %v472_v47 }
  0x11   :  { %416 = vmatpush3.bf16.msra.mxu1 %v461_v14  ;;  %442 = vmatprep.subr.bf16.mxu0 %v475_v23 }
  0x12   :  { %417 = vmatprep.subr.bf16.mxu1 %v462_v15 }
  0x14   :  { %443 = vmatpush3.bf16.msra.mxu0 %v473_v48 }
  0x15   :  { %418 = vmatpush3.bf16.msra.mxu1 %v463_v16 }
  0x16   :  { %419 = vmatprep.subr.bf16.mxu1 %v464_v17 }
  0x19   :  { %420 = vmatpush3.bf16.msra.mxu1 %v465_v18 }
  0x1a   :  { %421 = vmatprep.subr.bf16.mxu1 %v466_v19 }
  0x1d   :  { %422 = vmatpush3.bf16.msra.mxu1 %v467_v20 }
  0x1e   :  { %423 = vmatprep.subr.bf16.mxu1 %v468_v21 }
  0x21   :  { %424 = vmatpush3.bf16.msra.mxu1 %v469_v22 }
  0xd9   :  { %v97_v32 = vpop.f32.mrb[0].mxu0 }
  0xda   :  { %v98_v33 = vadd.f32 %v97_v32, %v37_v30  ;;  %v99_v34 = vpop.f32.mrb[1].mxu0 }
  0xdb   :  { %v100_v35 = vadd.f32 %v99_v34, %v41_v31  ;;  %v101_v36 = vpop.f32.mrb[2].mxu0 }
  0xdc   :  { %v102_v37 = vadd.f32 %v101_v36, %v37_v30  ;;  %v103_v38 = vpop.f32.mrb[3].mxu0  ;;  %v106_v40 = vmax.f32 %v98_v33, 0.0 }
  0xdd   :  { %v104_v39 = vadd.f32 %v103_v38, %v41_v31  ;;  %v107_v42 = vmax.f32 %v100_v35, 0.0 }
  0xde   :  { %v108_v41 = vmax.f32 %v102_v37, 0.0 }
  0xdf   :  { %v109_v43 = vmax.f32 %v104_v39, 0.0 }
  0xe0   :  { %v110_v44 = vpack.c.bf16 %v108_v41, %v106_v40 }
  0xe1   :  { %v111_v45 = vpack.c.bf16 %v109_v43, %v107_v42 }
  0xe3   :  { %279 = vmatprep.mubr.bf16.mxu1 %v111_v45 }
  0xe4   :  { %280 = vmatmul.mubr.bf16.vlgmr.msra.gmra.mrb[0].mxu1 %v110_v44 }
 0x1b7   :  { %v425_v49 = vpop.f32.mrb[0].mxu1 }
 0x1b8   :  { %v426_v51 = vpop.f32.mrb[1].mxu1 }
 0x1b9   :  { %v427_v52 = vadd.f32 %v426_v51, %v425_v49  ;;  %v428_v53 = vpop.f32.mrb[2].mxu1 }
 0x1ba   :  { %v429_v54 = vpop.f32.mrb[3].mxu1 }
 0x1bb   :  { %v282_v55 = vadd.f32 %v427_v52, %v386_v50  ;;  %v430_v56 = vadd.f32 %v429_v54, %v428_v53 }
 0x1bd   :  { %v285_v57 = vadd.f32 %v430_v56, %v386_v50  ;;  %v288_v58 = vmax.f32 %v282_v55, 0.0 }
 0x1bf   :  { %v289_v59 = vmax.f32 %v285_v57, 0.0 }
 0x1c1   :  { %v290_v60 = vpack.c.bf16 %v289_v59, %v288_v58 }
 0x1c3   :  { %445 = vmatmul.mubr.msk.bf16.vlgmr.msra.gmra.mrb[4].mxu0 %vm330_vm3, %v290_v60 }
 0x296   :  { %v368_v62 = vpop.f32.mrb[4].mxu0 }
 0x297   :  { %v369_v63 = vadd.f32 %v403_v61, %v368_v62  ;;  %v446_v0 = vpop.f32.mrb[5].mxu0 }
 0x298   :  { %v371_v1 = vpop.f32.mrb[6].mxu0 }
 0x299   :  { %376 = vst.msk [vmem:[%s611_s7] sm:$0xff] %vm375_vm4, %v369_v63  ;;  %v372_v2 = vadd.f32 %v403_v61, %v371_v1  ;;  %v447_v3 = vpop.f32.mrb[7].mxu0 }
 0x29b   :  { %377 = vst.msk [vmem:[%s611_s7 + $0x8] sm:$0xff] %vm375_vm4, %v372_v2 }

</bundles_post_ra>
